<compile_context>
chip_gen: v7x
topology: tpu7x:2x2x1
jax: 0.10.0
libtpu: 0.0.40
codegen_flags: <defaults>
</compile_context>

<pallas_src>
import functools

import jax
import jax.numpy as jnp
from jax.experimental import pallas as pl
from jax.experimental.pallas import tpu as pltpu

F32 = jnp.float32
BF16 = jnp.bfloat16
BN_EPS = 1e-5

# ----------------------------- tiling policy --------------------------------
TM_CAP = 4096                       # max rows per M tile
TN_CAP = 512                        # max cols per N tile
VMEM_BUDGET = 30 * 1024 * 1024      # target resident tile footprint per call
VMEM_LIMIT = 48 * 1024 * 1024       # Mosaic scoped VMEM limit (safe on v5e/v6e/v7x)


def _round_up(x, m):
    return ((x + m - 1) // m) * m


def _footprint(tm, tk, tn, out_bytes):
    """Approx VMEM bytes: double-buffered bf16 inputs + output + f32 accumulator."""
    inputs = 2 * (tm * tk * 2 + tk * tn * 2 + 2 * tn * 4)
    outputs = 2 * tm * tn * out_bytes
    acc = tm * tn * 4
    return inputs + outputs + acc


def _choose_tiles(M, K, N, out_bytes):
    K_pad = _round_up(K, 128)
    N_pad = _round_up(N, 128)

    # M tile: single tile when small, else the largest multiple-of-16 divisor of M
    # (avoids padding the big im2col matrix and minimizes B re-streaming).
    if M <= TM_CAP:
        tm = _round_up(M, 16)
        M_pad = tm
    else:
        tm = 2048
        for cand in range(TM_CAP, 15, -16):
            if M % cand == 0:
                tm = cand
                break
        M_pad = _round_up(M, tm)

    # N tile: largest tile <= TN_CAP dividing N_pad.
    tn = TN_CAP
    while N_pad % tn:
        tn //= 2
    tn = min(tn, N_pad)
    # Give the second TensorCore (v7x megacore) a parallel block when grid would be (1,1,k).
    if M_pad == tm and tn == N_pad and N_pad >= 256 and (N_pad // 2) % 128 == 0:
        tn = N_pad // 2

    # K tile: largest multiple-of-128 divisor of K_pad that fits the VMEM budget.
    d = K_pad // 128
    tk = 128
    for q in sorted((q for q in range(1, d + 1) if d % q == 0), reverse=True):
        cand = 128 * q
        if _footprint(tm, cand, tn, out_bytes) <= VMEM_BUDGET:
            tk = cand
            break
    return tm, tk, tn, M_pad, K_pad, N_pad


# -------- fused GEMM + per-output-channel affine (folded BN + bias) + ReLU ---
def _fused_mm_kernel(a_ref, b_ref, s_ref, t_ref, o_ref, acc_ref, *, relu):
    k = pl.program_id(2)

    @pl.when(k == 0)
    def _():
        acc_ref[...] = jnp.zeros_like(acc_ref)

    acc_ref[...] += jnp.dot(a_ref[...], b_ref[...],
                            preferred_element_type=jnp.float32)

    @pl.when(k == pl.num_programs(2) - 1)
    def _():
        y = acc_ref[...] * s_ref[...] + t_ref[...]
        if relu:
            y = jnp.maximum(y, 0.0)
        o_ref[...] = y.astype(o_ref.dtype)


_MM_CACHE = {}


def _get_mm(M_pad, K_pad, N_pad, tm, tk, tn, relu, out_dtype):
    key = (M_pad, K_pad, N_pad, tm, tk, tn, relu, out_dtype)
    if key in _MM_CACHE:
        return _MM_CACHE[key]
    out_bytes = jnp.dtype(out_dtype).itemsize
    cost = pl.CostEstimate(
        flops=2 * M_pad * K_pad * N_pad,
        transcendentals=0,
        bytes_accessed=2 * (M_pad * K_pad + K_pad * N_pad) + M_pad * N_pad * out_bytes,
    )
    f = pl.pallas_call(
        functools.partial(_fused_mm_kernel, relu=relu),
        out_shape=jax.ShapeDtypeStruct((M_pad, N_pad), out_dtype),
        grid_spec=pltpu.PrefetchScalarGridSpec(
            num_scalar_prefetch=0,
            grid=(M_pad // tm, N_pad // tn, K_pad // tk),
            in_specs=[
                pl.BlockSpec((tm, tk), lambda i, j, k: (i, k)),
                pl.BlockSpec((tk, tn), lambda i, j, k: (k, j)),
                pl.BlockSpec((1, tn), lambda i, j, k: (0, j)),
                pl.BlockSpec((1, tn), lambda i, j, k: (0, j)),
            ],
            out_specs=pl.BlockSpec((tm, tn), lambda i, j, k: (i, j)),
            scratch_shapes=[pltpu.VMEM((tm, tn), F32)],
        ),
        compiler_params=pltpu.CompilerParams(
            dimension_semantics=("parallel", "parallel", "arbitrary"),
            vmem_limit_bytes=VMEM_LIMIT),
        cost_estimate=cost,
    )
    _MM_CACHE[key] = f
    return f


def fused_matmul(a, b, scale, shift, relu, out_dtype=BF16):
    """out = relu_opt((a @ b) * scale + shift); scale/shift broadcast over rows."""
    M, K = a.shape
    K2, N = b.shape
    assert K == K2
    out_bytes = jnp.dtype(out_dtype).itemsize
    tm, tk, tn, M_pad, K_pad, N_pad = _choose_tiles(M, K, N, out_bytes)

    a = a.astype(BF16)
    b = b.astype(BF16)
    if M_pad != M or K_pad != K:
        a = jnp.pad(a, ((0, M_pad - M), (0, K_pad - K)))
    if K_pad != K or N_pad != N:
        b = jnp.pad(b, ((0, K_pad - K), (0, N_pad - N)))
    s = scale.reshape(1, N).astype(F32)
    t = shift.reshape(1, N).astype(F32)
    if N_pad != N:
        s = jnp.pad(s, ((0, 0), (0, N_pad - N)))
        t = jnp.pad(t, ((0, 0), (0, N_pad - N)))

    out = _get_mm(M_pad, K_pad, N_pad, tm, tk, tn, relu, out_dtype)(a, b, s, t)
    if M_pad != M or N_pad != N:
        out = out[:M, :N]
    return out


# ------------------- conv / convT layers as im2col GEMMs ---------------------
def _fold_bn(b, bn, cout):
    b = b.astype(F32)
    if bn is None:
        return jnp.ones((cout,), F32), b
    gamma, beta, mean, var = bn
    s = gamma / jnp.sqrt(var + BN_EPS)
    return s, beta - mean * s + b * s


def _im2col_nhwc(x, kh, kw, pad, k_total):
    """x: (N,H,W,C) -> (N*Ho*Wo, k_total) patch matrix, zero columns appended to k_total."""
    n, h, w, c = x.shape
    if pad:
        x = jnp.pad(x, ((0, 0), (pad, pad), (pad, pad), (0, 0)))
    ho = h + 2 * pad - kh + 1
    wo = w + 2 * pad - kw + 1
    cols = [x[:, i:i + ho, j:j + wo, :] for i in range(kh) for j in range(kw)]
    extra = k_total - c * kh * kw
    if extra > 0:
        cols.append(jnp.zeros((n, ho, wo, extra), x.dtype))
    patches = cols[0] if len(cols) == 1 else jnp.concatenate(cols, axis=-1)
    return patches.reshape(n * ho * wo, k_total), ho, wo


def conv_bn_relu(x, W, b, bn, relu, pad, out_dtype=BF16):
    """Conv2d (stride 1) + folded BatchNorm2d + optional ReLU.  x, out: NHWC."""
    cout, cin, kh, kw = W.shape
    n = x.shape[0]
    K = cin * kh * kw
    K_pad = _round_up(K, 128)
    patches, ho, wo = _im2col_nhwc(x.astype(BF16), kh, kw, pad, K_pad)
    bmat = jnp.transpose(W, (2, 3, 1, 0)).reshape(K, cout).astype(BF16)
    if K_pad != K:
        bmat = jnp.pad(bmat, ((0, K_pad - K), (0, 0)))
    scale, shift = _fold_bn(b, bn, cout)
    out = fused_matmul(patches, bmat, scale, shift, relu, out_dtype)
    return out.reshape(n, ho, wo, cout)


def convT_bn_relu(x, Wt, b, bn, relu, pad, out_dtype=BF16):
    """ConvTranspose2d (stride 1) rewritten as Conv with flipped/transposed weights."""
    cin, cout, kh, kw = Wt.shape
    Wc = jnp.transpose(jnp.flip(Wt, axis=(2, 3)), (1, 0, 2, 3))   # (Cout, Cin, kh, kw)
    return conv_bn_relu(x, Wc, b, bn, relu, pad=kh - 1 - pad, out_dtype=out_dtype)


def deconv67_bn_relu(x, Wt, b, bn):
    """ConvTranspose2d(4096,512,k=7,p=0) on a 1x1 input == one GEMM (no 49x zero im2col)."""
    n, h, w, cin = x.shape
    assert h == 1 and w == 1
    _, cout, kh, kw = Wt.shape
    a = x.reshape(n, cin)
    bmat = jnp.transpose(Wt, (0, 2, 3, 1)).reshape(cin, kh * kw * cout).astype(BF16)
    scale, shift = _fold_bn(b, bn, cout)
    out = fused_matmul(a, bmat, jnp.tile(scale, kh * kw), jnp.tile(shift, kh * kw),
                       relu=True, out_dtype=BF16)
    return out.reshape(n, kh, kw, cout)


# -------------- MaxPool2d(2,2, return_indices) / MaxUnpool2d(2,2) ------------
def maxpool2x2(x):
    # x: NHWC.  Window index encoding: 2*di + dj (row-major inside the 2x2 window).
    # NOTE: tie-breaking (first max) may differ from PyTorch for exactly-equal values.
    n, h, w, c = x.shape
    xr = x.reshape(n, h // 2, 2, w // 2, 2, c).transpose(0, 1, 3, 2, 4, 5)
    xr = xr.reshape(n, h // 2, w // 2, 4, c)
    idx = jnp.argmax(xr, axis=3).astype(jnp.int32)
    val = jnp.max(xr, axis=3)
    return val, idx


def maxunpool2x2(x, idx):
    n, h, w, c = x.shape
    zero = jnp.zeros((), x.dtype)
    parts = [jnp.where(idx == k, x, zero) for k in range(4)]
    y = jnp.stack(parts, axis=3)                                   # (n,h,w,4,c)
    y = y.reshape(n, h, w, 2, 2, c).transpose(0, 1, 3, 2, 4, 5)
    return y.reshape(n, 2 * h, 2 * w, c)


# --------------------- synthetic parameters (module shapes) ------------------
def _bn_params(cout):
    return (jnp.ones((cout,), F32), jnp.zeros((cout,), F32),
            jnp.zeros((cout,), F32), jnp.ones((cout,), F32))


def init_params(key, num_classes):
    keys = iter(jax.random.split(key, 64))

    def conv_p(cout, cin, kh, kw):
        std = (2.0 / (cin * kh * kw)) ** 0.5
        W = jax.random.normal(next(keys), (cout, cin, kh, kw), BF16) * std
        return W, jnp.zeros((cout,), F32), _bn_params(cout)

    def convT_p(cin, cout, kh, kw, with_bn=True):
        std = (2.0 / (cout * kh * kw)) ** 0.5
        W = jax.random.normal(next(keys), (cin, cout, kh, kw), BF16) * std
        bn = _bn_params(cout) if with_bn else None
        return W, jnp.zeros((cout,), F32), bn

    p = {}
    p['conv1'] = [conv_p(64, 3, 3, 3), conv_p(64, 64, 3, 3)]
    p['conv2'] = [conv_p(128, 64, 3, 3), conv_p(128, 128, 3, 3)]
    p['conv3'] = [conv_p(256, 128, 3, 3), conv_p(256, 256, 3, 3), conv_p(256, 256, 3, 3)]
    p['conv4'] = [conv_p(512, 256, 3, 3), conv_p(512, 512, 3, 3), conv_p(512, 512, 3, 3)]
    p['conv5'] = [conv_p(512, 512, 3, 3), conv_p(512, 512, 3, 3), conv_p(512, 512, 3, 3)]
    p['conv6'] = conv_p(4096, 512, 7, 7)
    p['conv7'] = conv_p(4096, 4096, 1, 1)
    p['deconv67'] = convT_p(4096, 512, 7, 7)
    p['deconv5'] = [convT_p(512, 512, 3, 3) for _ in range(3)]
    p['deconv4'] = [convT_p(512, 512, 3, 3), convT_p(512, 512, 3, 3), convT_p(512, 256, 3, 3)]
    p['deconv3'] = [convT_p(256, 256, 3, 3), convT_p(256, 256, 3, 3), convT_p(256, 128, 3, 3)]
    p['deconv2'] = [convT_p(128, 128, 3, 3), convT_p(128, 64, 3, 3)]
    p['deconv1'] = [convT_p(64, 64, 3, 3), convT_p(64, 64, 3, 3),
                    convT_p(64, num_classes, 1, 1, with_bn=False)]
    return p


# ----------------------------- forward pass ----------------------------------
def deconvnet_forward(x, p):
    """x: NCHW input; returns NCHW logits (mirrors DeconvNet.forward)."""
    x = jnp.transpose(x, (0, 2, 3, 1)).astype(BF16)          # NHWC internally

    def run_convs(x, layers):
        for W, b, bn in layers:
            x = conv_bn_relu(x, W, b, bn, relu=True, pad=1)
        return x

    def run_deconvs(x, layers):
        for Wt, b, bn in layers:
            x = convT_bn_relu(x, Wt, b, bn, relu=True, pad=1)
        return x

    x = run_convs(x, p['conv1']); x, i1 = maxpool2x2(x)
    x = run_convs(x, p['conv2']); x, i2 = maxpool2x2(x)
    x = run_convs(x, p['conv3']); x, i3 = maxpool2x2(x)
    x = run_convs(x, p['conv4']); x, i4 = maxpool2x2(x)
    x = run_convs(x, p['conv5']); x, i5 = maxpool2x2(x)

    W, b, bn = p['conv6']
    x = conv_bn_relu(x, W, b, bn, relu=True, pad=0)          # 7x7 -> 1x1
    W, b, bn = p['conv7']
    x = conv_bn_relu(x, W, b, bn, relu=True, pad=0)          # 1x1 conv
    Wt, b, bn = p['deconv67']
    x = deconv67_bn_relu(x, Wt, b, bn)                       # 1x1 -> 7x7 (single GEMM)

    x = maxunpool2x2(x, i5); x = run_deconvs(x, p['deconv5'])
    x = maxunpool2x2(x, i4); x = run_deconvs(x, p['deconv4'])
    x = maxunpool2x2(x, i3); x = run_deconvs(x, p['deconv3'])
    x = maxunpool2x2(x, i2); x = run_deconvs(x, p['deconv2'])
    x = maxunpool2x2(x, i1)

    Wt, b, bn = p['deconv1'][0]
    x = convT_bn_relu(x, Wt, b, bn, relu=True, pad=1)
    Wt, b, bn = p['deconv1'][1]
    x = convT_bn_relu(x, Wt, b, bn, relu=True, pad=1)
    Wt, b, _ = p['deconv1'][2]                               # final 1x1: no BN, no ReLU
    x = convT_bn_relu(x, Wt, b, None, relu=False, pad=0, out_dtype=F32)
    return jnp.transpose(x, (0, 3, 1, 2))                    # back to NCHW


# ----------------------------------- main -------------------------------------
if __name__ == "__main__":
    key = jax.random.PRNGKey(0)
    k_params, k_x, k_a, k_b = jax.random.split(key, 4)

    # Tiny numerical sanity check of the fused GEMM kernel against a plain-JAX reference.
    a = jax.random.normal(k_a, (64, 200), F32)
    b = jax.random.normal(k_b, (200, 96), F32)
    sc = jnp.linspace(0.5, 1.5, 96, dtype=F32)
    sh = jnp.linspace(-0.2, 0.2, 96, dtype=F32)
    got = fused_matmul(a, b, sc, sh, relu=True, out_dtype=F32)
    ref = jnp.maximum(jnp.dot(a.astype(BF16).astype(F32),
                              b.astype(BF16).astype(F32)) * sc + sh, 0.0)
    err = jnp.max(jnp.abs(got - ref)) / (jnp.max(jnp.abs(ref)) + 1e-6)
    assert jax.block_until_ready(err) < 5e-2, f"fused_matmul mismatch: {err}"

    # The VGG16-BN backbone fixes input channels = 3, and the 7x7 conv6 after five 2x2
    # poolings requires spatial >= 224, so the smallest consistent input is (1,3,224,224).
    num_classes = 21
    params = init_params(k_params, num_classes)
    x = jax.random.normal(k_x, (1, 3, 224, 224), F32)

    out = deconvnet_forward(x, params)
    out = jax.block_until_ready(out)
    assert out.shape == (1, num_classes, 224, 224), out.shape
    print("KERNEL_OK")
</pallas_src>

<mosaic_0001>
module attributes {stable_mosaic.version = 11 : i64} {
  func.func @_fused_mm_kernel(%arg0: i32, %arg1: i32, %arg2: i32, %arg3: memref<64x256xbf16, #tpu.memory_space<vmem>>, %arg4: memref<256x128xbf16, #tpu.memory_space<vmem>>, %arg5: memref<1x128xf32, #tpu.memory_space<vmem>>, %arg6: memref<1x128xf32, #tpu.memory_space<vmem>>, %arg7: memref<64x128xf32, #tpu.memory_space<vmem>>, %arg8: memref<64x128xf32, #tpu.memory_space<vmem>>) attributes {dimension_semantics = [#tpu.dimension_semantics<parallel>, #tpu.dimension_semantics<parallel>, #tpu.dimension_semantics<arbitrary>], iteration_bounds = array<i64: 1, 1, 1>, scalar_prefetch = 0 : i64, scratch_operands = 1 : i64, tpu.core_type = #tpu.core_type<tc>, window_params = [{transform_indices = @transform_0, window_bounds = array<i64: 64, 256>}, {transform_indices = @transform_1, window_bounds = array<i64: 256, 128>}, {transform_indices = @transform_2, window_bounds = array<i64: 1, 128>}, {transform_indices = @transform_3, window_bounds = array<i64: 1, 128>}, {transform_indices = @transform_4, window_bounds = array<i64: 64, 128>}]} {
    %c0_i32 = arith.constant 0 : i32
    %0 = arith.cmpi eq, %arg2, %c0_i32 : i32
    %1 = arith.extui %0 : i1 to i32
    %c0_i32_0 = arith.constant 0 : i32
    %2 = arith.cmpi ne, %1, %c0_i32_0 : i32
    scf.if %2 {
      %cst_10 = arith.constant 0.000000e+00 : f32
      %12 = vector.broadcast %cst_10 : f32 to vector<64x128xf32>
      %c0_11 = arith.constant 0 : index
      %c0_12 = arith.constant 0 : index
      %13 = vector.load %arg8[%c0_11, %c0_12] : memref<64x128xf32, #tpu.memory_space<vmem>>, vector<64x128xf32>
      tpu.vector_store %arg8[%c0_11, %c0_12], %12 {strides = array<i32>} : memref<64x128xf32, #tpu.memory_space<vmem>>, vector<64x128xf32>,
    } else {
    }
    %c0 = arith.constant 0 : index
    %c0_1 = arith.constant 0 : index
    %3 = vector.load %arg8[%c0, %c0_1] : memref<64x128xf32, #tpu.memory_space<vmem>>, vector<64x128xf32>
    %c0_2 = arith.constant 0 : index
    %c0_3 = arith.constant 0 : index
    %4 = vector.load %arg3[%c0_2, %c0_3] : memref<64x256xbf16, #tpu.memory_space<vmem>>, vector<64x256xbf16>
    %c0_4 = arith.constant 0 : index
    %c0_5 = arith.constant 0 : index
    %5 = vector.load %arg4[%c0_4, %c0_5] : memref<256x128xbf16, #tpu.memory_space<vmem>>, vector<256x128xbf16>
    %cst = arith.constant dense<0.000000e+00> : vector<64x128xf32>
    %6 = tpu.matmul %4, %5, %cst {dimension_numbers = #tpu.dot_dimension_numbers<[1], [0], [0], [1], [0, 0, 1, 1], [], []>} : vector<64x256xbf16>, vector<256x128xbf16>, vector<64x128xf32> -> vector<64x128xf32>
    %7 = arith.addf %3, %6 : vector<64x128xf32>
    %c0_6 = arith.constant 0 : index
    %c0_7 = arith.constant 0 : index
    %8 = vector.load %arg8[%c0_6, %c0_7] : memref<64x128xf32, #tpu.memory_space<vmem>>, vector<64x128xf32>
    tpu.vector_store %arg8[%c0_6, %c0_7], %7 {strides = array<i32>} : memref<64x128xf32, #tpu.memory_space<vmem>>, vector<64x128xf32>,
    %c0_i32_8 = arith.constant 0 : i32
    %9 = arith.cmpi eq, %arg2, %c0_i32_8 : i32
    %10 = arith.extui %9 : i1 to i32
    %c0_i32_9 = arith.constant 0 : i32
    %11 = arith.cmpi ne, %10, %c0_i32_9 : i32
    scf.if %11 {
      %c0_10 = arith.constant 0 : index
      %c0_11 = arith.constant 0 : index
      %12 = vector.load %arg8[%c0_10, %c0_11] : memref<64x128xf32, #tpu.memory_space<vmem>>, vector<64x128xf32>
      %c0_12 = arith.constant 0 : index
      %c0_13 = arith.constant 0 : index
      %13 = vector.load %arg5[%c0_12, %c0_13] : memref<1x128xf32, #tpu.memory_space<vmem>>, vector<1x128xf32>
      %14 = vector.broadcast %13 : vector<1x128xf32> to vector<64x128xf32>
      %15 = arith.mulf %12, %14 : vector<64x128xf32>
      %c0_14 = arith.constant 0 : index
      %c0_15 = arith.constant 0 : index
      %16 = vector.load %arg6[%c0_14, %c0_15] : memref<1x128xf32, #tpu.memory_space<vmem>>, vector<1x128xf32>
      %17 = vector.broadcast %16 : vector<1x128xf32> to vector<64x128xf32>
      %18 = arith.addf %15, %17 : vector<64x128xf32>
      %cst_16 = arith.constant 0.000000e+00 : f32
      %19 = vector.broadcast %cst_16 : f32 to vector<64x128xf32>
      %20 = arith.maximumf %18, %19 : vector<64x128xf32>
      %c0_17 = arith.constant 0 : index
      %c0_18 = arith.constant 0 : index
      %21 = vector.load %arg7[%c0_17, %c0_18] : memref<64x128xf32, #tpu.memory_space<vmem>>, vector<64x128xf32>
      tpu.vector_store %arg7[%c0_17, %c0_18], %20 {strides = array<i32>} : memref<64x128xf32, #tpu.memory_space<vmem>>, vector<64x128xf32>,
    } else {
    }
    return
  }
  func.func @transform_0(%arg0: i32, %arg1: i32, %arg2: i32) -> (i32, i32) {
    %c0_i32 = arith.constant 0 : i32
    return %arg0, %arg2 : i32, i32
  }
  func.func @transform_1(%arg0: i32, %arg1: i32, %arg2: i32) -> (i32, i32) {
    %c0_i32 = arith.constant 0 : i32
    return %arg2, %arg1 : i32, i32
  }
  func.func @transform_2(%arg0: i32, %arg1: i32, %arg2: i32) -> (i32, i32) {
    %c0_i32 = arith.constant 0 : i32
    %c0_i32_0 = arith.constant 0 : i32
    return %c0_i32, %arg1 : i32, i32
  }
  func.func @transform_3(%arg0: i32, %arg1: i32, %arg2: i32) -> (i32, i32) {
    %c0_i32 = arith.constant 0 : i32
    %c0_i32_0 = arith.constant 0 : i32
    return %c0_i32, %arg1 : i32, i32
  }
  func.func @transform_4(%arg0: i32, %arg1: i32, %arg2: i32) -> (i32, i32) {
    %c0_i32 = arith.constant 0 : i32
    return %arg0, %arg1 : i32, i32
  }
}

</mosaic_0001>

<bundles_post_ra>
// kernel: tpu_custom_call.1
= control target key start
LH: loop header
LB: loop body
LE: loop exit
PB: predicated region body
PF: predicated region fallthrough
CT: control target
= control target key end

     0   :  { %9 = vsyncpa [#allocation4], 0  ;;  %s668_s0 = inlined_call_operand.hbm [shape: bf16[64,256], index: 0, kind: input, shape index: {}]   ;;  %s669_s1 = inlined_call_operand.hbm [shape: bf16[256,128], index: 1, kind: input, shape index: {}]   ;;  %s670_s2 = inlined_call_operand.vmem [shape: f32[1,128], index: 2, kind: input, shape index: {}]   ;;  %s671_s3 = inlined_call_operand.vmem [shape: f32[1,128], index: 3, kind: input, shape index: {}]   ;;  %s672_s4 = inlined_call_operand.hbm [shape: f32[64,128], index: 4, kind: output, shape index: {}]  }
   0x1   :  { %10 = vsyncpa [#allocation7], 0 }
   0x2   :  { %11 = vsyncpa [#allocation5], 0  ;;  %s588_s15 = smov [#allocation3]   ;;  %s516_s19 = scalar_lea.hbm %s668_s0, 1024 }
   0x3   :  { %s17_s16 = sshll.u32 %s588_s15, 4  ;;  %p517_p0 = scmp.ne.s32.totalorder %s668_s0, %s516_s19  ;;  %s18_s16 = int_to_ptr.vmem [resolvable:$true] %s17_s16 }
   0x4   :  { %p520_p1 = scmp.lt.u32.totalorder %s516_s19, %s668_s0 }
   0x6   :  { %p522_p2 = pnand %p520_p1, %p517_p0 }
   0x8   :  { %525 = shalt.err (!%p522_p2)
}
   0x9   :  { %s526_s24 = scalar_lea.vmem %s18_s16, 1024  ;;  %p531_p4 = scmp.lt.s32.totalorder %s18_s16, %s18_s16 }
   0xa   :  { %p527_p3 = scmp.ne.s32.totalorder %s18_s16, %s526_s24  ;;  %p532_p5 = scmp.lt.s32.totalorder %s526_s24, %s526_s24 }
   0xc   :  { %p533_p6 = por %p532_p5, %p531_p4 }
   0xe   :  { %p534_p7 = pnand %p533_p6, %p527_p3 }
  0x10   :  { %537 = shalt.err (!%p534_p7)
}
  0x11   :  { %s589_s25 = smov 128   ;;  %s590_s26 = smov 8  }
  0x12   :  { %23 = dma.hbm_to_vmem [thread:$0]  %s668_s0, 1024, %s18_s16, [#allocation4], %s589_s25, %s589_s25, %s590_s26  }
  0x13   :  { %s591_s29 = smov [#allocation6]   ;;  %s538_s7 = scalar_lea.hbm %s669_s1, 2048 }
  0x14   :  { %s29_s30 = sshll.u32 %s591_s29, 4  ;;  %p539_p8 = scmp.ne.s32.totalorder %s669_s1, %s538_s7  ;;  %s30_s30 = int_to_ptr.vmem [resolvable:$true] %s29_s30 }
  0x15   :  { %p542_p9 = scmp.lt.u32.totalorder %s538_s7, %s669_s1 }
  0x17   :  { %p544_p10 = pnand %p542_p9, %p539_p8 }
  0x19   :  { %547 = shalt.err (!%p544_p10)
}
  0x1a   :  { %s548_s12 = scalar_lea.vmem %s30_s30, 2048  ;;  %p553_p12 = scmp.lt.s32.totalorder %s30_s30, %s30_s30 }
  0x1b   :  { %p549_p11 = scmp.ne.s32.totalorder %s30_s30, %s548_s12  ;;  %p554_p13 = scmp.lt.s32.totalorder %s548_s12, %s548_s12 }
  0x1d   :  { %p555_p0 = por %p554_p13, %p553_p12 }
  0x1f   :  { %p556_p1 = pnand %p555_p0, %p549_p11 }
  0x21   :  { %559 = shalt.err (!%p556_p1)
}
  0x22   :  { %s592_s0 = smov 64   ;;  %s593_s13 = smov 4  }
  0x23   :  { %35 = dma.hbm_to_vmem [thread:$0]  %s669_s1, 2048, %s30_s30, [#allocation7], %s592_s0, %s592_s0, %s593_s13  }
  0x24   :  { %582 = dma.done.wait [#allocation4], 1024  }
  0x25   :  { %583 = vsyncadd [#allocation4], 4294966272 }
  0x26   :  { %584 = dma.done.wait [#allocation7], 2048  }
  0x27   :  { %585 = vsyncadd [#allocation7], 4294965248  ;;  %v488_v0 = vld [vmem:[#allocation6 + $0x40] sm:$0xff]   ;;  %v490_v2 = vld [vmem:[#allocation6 + $0x48] sm:$0xff]  }
  0x28   :  { %v489_v1 = vld [vmem:[#allocation6] sm:$0xff]   ;;  %425 = vmatprep.subr.bf16.mxu0 %v488_v0  ;;  %465 = vmatprep.subr.bf16.mxu1 %v488_v0  ;;  %v491_v3 = vld [vmem:[#allocation6 + $0x8] sm:$0xff]   ;;  %v492_v4 = vld [vmem:[#allocation6 + $0x50] sm:$0xff]  }
  0x29   :  { %426 = vmatpush3.bf16.msra.mxu0 %v489_v1  ;;  %473 = vmatpush3.bf16.msra.mxu1 %v489_v1  ;;  %v493_v5 = vld [vmem:[#allocation6 + $0x10] sm:$0xff]   ;;  %v494_v6 = vld [vmem:[#allocation6 + $0x58] sm:$0xff]   ;;  %v496_v8 = vld [vmem:[#allocation6 + $0x60] sm:$0xff]  }
  0x2a   :  { %427 = vmatprep.subr.bf16.mxu0 %v490_v2  ;;  %466 = vmatprep.subr.bf16.mxu1 %v490_v2  ;;  %v495_v7 = vld [vmem:[#allocation6 + $0x18] sm:$0xff]   ;;  %v497_v9 = vld [vmem:[#allocation6 + $0x20] sm:$0xff]   ;;  %v498_v10 = vld [vmem:[#allocation6 + $0x68] sm:$0xff]  }
  0x2b   :  { %v506_v11 = vld [vmem:[#allocation3 + $0x4] ss:$8 sps:$4 sm:$0xff]   ;;  %v500_v14 = vld [vmem:[#allocation6 + $0x70] sm:$0xff]   ;;  %v502_v16 = vld [vmem:[#allocation6 + $0x78] sm:$0xff]  }
  0x2c   :  { %v509_v12 = vld [vmem:[#allocation3 + $0x24] ss:$8 sps:$4 sm:$0xff]   ;;  %275 = vmatprep.mubr.bf16.mxu0 %v506_v11  ;;  %v501_v15 = vld [vmem:[#allocation6 + $0x30] sm:$0xff]   ;;  %v503_v17 = vld [vmem:[#allocation6 + $0x38] sm:$0xff]  }
  0x2d   :  { %428 = vmatpush3.bf16.msra.mxu0 %v491_v3  ;;  %474 = vmatpush3.bf16.msra.mxu1 %v491_v3  ;;  %v499_v13 = vld [vmem:[#allocation6 + $0x28] sm:$0xff]   ;;  %v510_v20 = vld [vmem:[#allocation3 + $0x14] ss:$8 sps:$4 sm:$0xff]   ;;  %v514_v22 = vld [vmem:[#allocation3 + $0x10] ss:$8 sps:$4 sm:$0xff]  }
  0x2e   :  { %429 = vmatprep.subr.bf16.mxu0 %v492_v4  ;;  %467 = vmatprep.subr.bf16.mxu1 %v492_v4  ;;  %v504_v18 = vld [vmem:[#allocation3] ss:$8 sps:$4 sm:$0xff]   ;;  %v512_v21 = vld [vmem:[#allocation3 + $0x34] ss:$8 sps:$4 sm:$0xff]   ;;  %v515_v23 = vld [vmem:[#allocation3 + $0x30] ss:$8 sps:$4 sm:$0xff]  }
  0x2f   :  { %291 = vmatprep.mubr.bf16.mxu1 %v509_v12  ;;  %v507_v19 = vld [vmem:[#allocation3 + $0x20] ss:$8 sps:$4 sm:$0xff]  }
  0x30   :  { %v423_v27 = vld [vmem:[%s670_s2] ss:$0 sm:$0xff]  ;;  %s594_s2 = smov [#allocation8]  }
  0x31   :  { %430 = vmatpush3.bf16.msra.mxu0 %v493_v5  ;;  %475 = vmatpush3.bf16.msra.mxu1 %v493_v5  ;;  %v424_v33 = vld [vmem:[%s671_s3] ss:$0 sm:$0xff]  ;;  %s386_s3 = sshll.u32 %s594_s2, 4  ;;  %s387_s3 = int_to_ptr.vmem [resolvable:$true] %s386_s3 }
  0x32   :  { %431 = vmatprep.subr.bf16.mxu0 %v494_v6  ;;  %468 = vmatprep.subr.bf16.mxu1 %v494_v6  ;;  %s560_s19 = scalar_lea.vmem %s387_s3, 1024  ;;  %p565_p3 = scmp.lt.s32.totalorder %s387_s3, %s387_s3 }
  0x33   :  { %p561_p2 = scmp.ne.s32.totalorder %s387_s3, %s560_s19  ;;  %p566_p4 = scmp.lt.s32.totalorder %s560_s19, %s560_s19 }
  0x35   :  { %432 = vmatpush3.bf16.msra.mxu0 %v495_v7  ;;  %476 = vmatpush3.bf16.msra.mxu1 %v495_v7  ;;  %p567_p5 = por %p566_p4, %p565_p3 }
  0x36   :  { %433 = vmatprep.subr.bf16.mxu0 %v496_v8  ;;  %469 = vmatprep.subr.bf16.mxu1 %v496_v8 }
  0x37   :  { %p568_p6 = pnand %p567_p5, %p561_p2 }
  0x39   :  { %434 = vmatpush3.bf16.msra.mxu0 %v497_v9  ;;  %477 = vmatpush3.bf16.msra.mxu1 %v497_v9 }
  0x3a   :  { %435 = vmatprep.subr.bf16.mxu0 %v498_v10  ;;  %470 = vmatprep.subr.bf16.mxu1 %v498_v10 }
  0x3d   :  { %436 = vmatpush3.bf16.msra.mxu0 %v499_v13  ;;  %478 = vmatpush3.bf16.msra.mxu1 %v499_v13 }
  0x3e   :  { %437 = vmatprep.subr.bf16.mxu0 %v500_v14  ;;  %471 = vmatprep.subr.bf16.mxu1 %v500_v14 }
  0x41   :  { %438 = vmatpush3.bf16.msra.mxu0 %v501_v15  ;;  %479 = vmatpush3.bf16.msra.mxu1 %v501_v15 }
  0x42   :  { %439 = vmatprep.subr.bf16.mxu0 %v502_v16  ;;  %472 = vmatprep.subr.bf16.mxu1 %v502_v16 }
  0x45   :  { %440 = vmatpush3.bf16.msra.mxu0 %v503_v17  ;;  %480 = vmatpush3.bf16.msra.mxu1 %v503_v17 }
  0x48   :  { %276 = vmatmul.mubr.bf16.vlgmr.msra.gmra.mrb[0].mxu0 %v504_v18  ;;  %292 = vmatmul.mubr.bf16.vlgmr.msra.gmra.mrb[0].mxu1 %v507_v19 }
  0x49   :  { %283 = vmatprep.mubr.bf16.mxu0 %v510_v20  ;;  %299 = vmatprep.mubr.bf16.mxu1 %v512_v21 }
  0x50   :  { %284 = vmatmul.mubr.bf16.gmra.mrb[4].mxu0 %v514_v22  ;;  %300 = vmatmul.mubr.bf16.gmra.mrb[4].mxu1 %v515_v23 }
 0x11b   :  { %v441_v24 = vpop.f32.mrb[0].mxu0  ;;  %v453_v25 = vpop.f32.mrb[0].mxu1 }
 0x11c   :  { %v442_v26 = vpop.f32.mrb[1].mxu0  ;;  %v454_v28 = vpop.f32.mrb[1].mxu1 }
 0x11d   :  { %v443_v29 = vadd.f32 %v442_v26, %v441_v24  ;;  %v455_v30 = vadd.f32 %v454_v28, %v453_v25  ;;  %v444_v31 = vpop.f32.mrb[2].mxu0  ;;  %v456_v32 = vpop.f32.mrb[2].mxu1 }
 0x11e   :  { %v445_v34 = vpop.f32.mrb[3].mxu0  ;;  %v457_v35 = vpop.f32.mrb[3].mxu1 }
 0x11f   :  { %v342_v36 = vmul.f32 %v443_v29, %v423_v27  ;;  %v346_v37 = vmul.f32 %v455_v30, %v423_v27  ;;  %v446_v38 = vadd.f32 %v445_v34, %v444_v31  ;;  %v458_v39 = vadd.f32 %v457_v35, %v456_v32 }
 0x121   :  { %v357_v40 = vadd.f32 %v424_v33, %v342_v36  ;;  %v361_v41 = vadd.f32 %v424_v33, %v346_v37  ;;  %v343_v42 = vmul.f32 %v446_v38, %v423_v27  ;;  %v347_v43 = vmul.f32 %v458_v39, %v423_v27 }
 0x123   :  { %v365_v44 = vmax.f32 %v357_v40, 0.0  ;;  %v369_v45 = vmax.f32 %v361_v41, 0.0  ;;  %v358_v46 = vadd.f32 %v424_v33, %v343_v42  ;;  %v362_v47 = vadd.f32 %v424_v33, %v347_v43  ;;  %v447_v48 = vpop.f32.mrb[4].mxu0  ;;  %v459_v49 = vpop.f32.mrb[4].mxu1 }
 0x124   :  { %v448_v50 = vpop.f32.mrb[5].mxu0  ;;  %v460_v51 = vpop.f32.mrb[5].mxu1 }
 0x125   :  { %373 = vst [vmem:[#allocation8] sm:$0xff] %v365_v44  ;;  %377 = vst [vmem:[#allocation8 + $0x20] sm:$0xff] %v369_v45  ;;  %v366_v52 = vmax.f32 %v358_v46, 0.0  ;;  %v370_v53 = vmax.f32 %v362_v47, 0.0  ;;  %v449_v54 = vadd.f32 %v448_v50, %v447_v48  ;;  %v461_v55 = vadd.f32 %v460_v51, %v459_v49  ;;  %v450_v56 = vpop.f32.mrb[6].mxu0  ;;  %v462_v57 = vpop.f32.mrb[6].mxu1 }
 0x126   :  { %v451_v58 = vpop.f32.mrb[7].mxu0  ;;  %v463_v59 = vpop.f32.mrb[7].mxu1 }
 0x127   :  { %374 = vst [vmem:[#allocation8 + $0x8] sm:$0xff] %v366_v52  ;;  %378 = vst [vmem:[#allocation8 + $0x28] sm:$0xff] %v370_v53  ;;  %v344_v60 = vmul.f32 %v449_v54, %v423_v27  ;;  %v348_v61 = vmul.f32 %v461_v55, %v423_v27  ;;  %v452_v62 = vadd.f32 %v451_v58, %v450_v56 }
 0x128   :  { %v464_v63 = vadd.f32 %v463_v59, %v462_v57 }
 0x129   :  { %v359_v0 = vadd.f32 %v424_v33, %v344_v60  ;;  %v363_v1 = vadd.f32 %v424_v33, %v348_v61  ;;  %v345_v2 = vmul.f32 %v452_v62, %v423_v27 }
 0x12a   :  { %v349_v3 = vmul.f32 %v464_v63, %v423_v27 }
 0x12b   :  { %v367_v4 = vmax.f32 %v359_v0, 0.0  ;;  %v371_v5 = vmax.f32 %v363_v1, 0.0  ;;  %v360_v6 = vadd.f32 %v424_v33, %v345_v2 }
 0x12c   :  { %v364_v7 = vadd.f32 %v424_v33, %v349_v3 }
 0x12d   :  { %375 = vst [vmem:[#allocation8 + $0x10] sm:$0xff] %v367_v4  ;;  %379 = vst [vmem:[#allocation8 + $0x30] sm:$0xff] %v371_v5  ;;  %v368_v8 = vmax.f32 %v360_v6, 0.0 }
 0x12e   :  { %v372_v9 = vmax.f32 %v364_v7, 0.0 }
 0x12f   :  { %376 = vst [vmem:[#allocation8 + $0x18] sm:$0xff] %v368_v8 }
 0x130   :  { %380 = vst [vmem:[#allocation8 + $0x38] sm:$0xff] %v372_v9 }
 0x131   :  { %571 = shalt.err (!%p568_p6)
}
 0x132   :  { %s572_s22 = scalar_lea.hbm %s672_s4, 1024 }
 0x133   :  { %p573_p7 = scmp.ne.s32.totalorder %s672_s4, %s572_s22  ;;  %p576_p8 = scmp.lt.u32.totalorder %s572_s22, %s672_s4 }
 0x135   :  { %p578_p9 = pnand %p576_p8, %p573_p7 }
 0x137   :  { %581 = shalt.err (!%p578_p9)
}
 0x138   :  { %392 = dma.vmem_to_hbm [thread:$0]  %s387_s3, 1024, %s672_s4, [#allocation5], %s589_s25, %s589_s25, %s590_s26  }
 0x139   :  { %586 = dma.done.wait [#allocation5], 1024  }
 0x13a   :  { %587 = vsyncadd [#allocation5], 4294966272 }
 0x13b   :  { %396 = vsyncpa [#allocation4], 1 }
 0x13c   :  { %397 = vsyncpa [#allocation7], 1 }
 0x13d   :  { %398 = vsyncpa [#allocation5], 1 }

</bundles_post_ra>
